<compile_context>
chip_gen: v5e
topology: v5e:2x2
jax: 0.10.0
libtpu: 0.0.40
codegen_flags: <defaults>
</compile_context>

<pallas_src>
from functools import partial

import jax
import jax.numpy as jnp
from jax import lax
from jax.experimental import pallas as pl
from jax.experimental.pallas import tpu as pltpu


# --------------------------------------------------------------------------- #
# Kernel
# --------------------------------------------------------------------------- #
def _vicreg_kernel(x_ref, y_ref, out_ref,
                   sum_x_ref, sum_y_ref, sqd_ref,
                   gram_x_ref, gram_y_ref,
                   *, gamma: float, n_total: int, d: int,
                   block_n: int, mask_tail: bool):
    step = pl.program_id(0)

    # ---- init accumulators on the first grid step -------------------------
    @pl.when(step == 0)
    def _init():
        sum_x_ref[...] = jnp.zeros_like(sum_x_ref)
        sum_y_ref[...] = jnp.zeros_like(sum_y_ref)
        sqd_ref[...] = jnp.zeros_like(sqd_ref)
        gram_x_ref[...] = jnp.zeros_like(gram_x_ref)
        gram_y_ref[...] = jnp.zeros_like(gram_y_ref)

    x_raw = x_ref[...]                      # native dtype (f32 or bf16)
    y_raw = y_ref[...]

    if mask_tail:
        # Zero padded rows of the (possibly partial) last tile before any
        # accumulation so sums, Grams and the diff term stay exact.
        row = lax.broadcasted_iota(jnp.int32, (block_n, d), 0)
        valid = (row + step * block_n) < n_total
        x_raw = jnp.where(valid, x_raw, jnp.zeros((), x_raw.dtype))
        y_raw = jnp.where(valid, y_raw, jnp.zeros((), y_raw.dtype))

    x = x_raw.astype(jnp.float32)
    y = y_raw.astype(jnp.float32)

    # ---- accumulate sufficient statistics ---------------------------------
    diff = x - y
    sqd_ref[...] += jnp.sum(diff * diff, axis=0, keepdims=True)   # lane partials
    sum_x_ref[...] += jnp.sum(x, axis=0, keepdims=True)
    sum_y_ref[...] += jnp.sum(y, axis=0, keepdims=True)

    # Gram over the batch axis: contraction over dim 0 of both operands —
    # no explicit transpose of the (block_n, D) tile.  Native dtype feeds the
    # MXU; accumulation is f32.
    dn = (((0,), (0,)), ((), ()))
    gram_x_ref[...] += lax.dot_general(
        x_raw, x_raw, dimension_numbers=dn, preferred_element_type=jnp.float32)
    gram_y_ref[...] += lax.dot_general(
        y_raw, y_raw, dimension_numbers=dn, preferred_element_type=jnp.float32)

    # ---- finalize on the last grid step ------------------------------------
    @pl.when(step == pl.num_programs(0) - 1)
    def _finalize():
        nf = float(n_total)
        inv = jnp.sum(sqd_ref[...]) * (1.0 / (nf * d))             # MSE scalar

        eye = (lax.broadcasted_iota(jnp.int32, (d, d), 0)
               == lax.broadcasted_iota(jnp.int32, (d, d), 1))
        row_id8 = lax.broadcasted_iota(jnp.int32, (8, d), 0)

        def branch(sum_ref, gram_ref):
            gram = gram_ref[...]                                   # (D, D) f32
            mean = sum_ref[...] * (1.0 / nf)                       # (1, D)

            # diag(G) as a lane-dense (1, D) row via a masked sublane reduce;
            # unbiased per-feature variance == diag of the covariance matrix.
            diag = jnp.sum(jnp.where(eye, gram, 0.0), axis=0, keepdims=True)
            var_raw = (diag - nf * mean * mean) * (1.0 / (nf - 1.0))
            std = jnp.sqrt(jnp.maximum(var_raw, 0.0))
            var_loss = jnp.mean(jnp.maximum(gamma - std, 0.0))

            # ||cov||_F^2 via the closed form (no DxD temporaries):
            #   ||G - n m m^T||_F^2 = ||G||_F^2 - 2 n (m^T G m) + n^2 (m^T m)^2
            g_frob = jnp.sum(gram * gram)
            mean8 = jnp.where(row_id8 == 0, mean, 0.0)             # (8, D)
            mG8 = lax.dot_general(mean8, gram,
                                  dimension_numbers=(((1,), (0,)), ((), ())),
                                  preferred_element_type=jnp.float32)  # (8, D)
            mGm = jnp.sum(mG8 * mean8)                             # m^T G m
            mm = jnp.sum(mean * mean)                              # m^T m
            c_frob = (g_frob - 2.0 * nf * mGm + nf * nf * mm * mm) \
                * (1.0 / ((nf - 1.0) * (nf - 1.0)))
            # off-diagonal Frobenius^2 = total - diag^2 (diag(cov) == var_raw)
            cov_loss = (c_frob - jnp.sum(var_raw * var_raw)) * (1.0 / d)
            return var_loss, cov_loss

        vx, cx = branch(sum_x_ref, gram_x_ref)
        vy, cy = branch(sum_y_ref, gram_y_ref)

        # Coalesced, lane-dense output row: [inv, var_x, var_y, cov_x, cov_y, 0...]
        lane = lax.broadcasted_iota(jnp.int32, (1, out_ref.shape[1]), 1)
        out_ref[...] = (jnp.where(lane == 0, inv, 0.0)
                        + jnp.where(lane == 1, vx, 0.0)
                        + jnp.where(lane == 2, vy, 0.0)
                        + jnp.where(lane == 3, cx, 0.0)
                        + jnp.where(lane == 4, cy, 0.0))


# --------------------------------------------------------------------------- #
# Tiling / VMEM planning (generation-aware)
# --------------------------------------------------------------------------- #
def _round_up(x: int, m: int) -> int:
    return ((x + m - 1) // m) * m


def _tpu_vmem_capacity() -> int:
    try:
        return int(pltpu.get_tpu_info().vmem_capacity_bytes)
    except Exception:
        return 64 * 1024 * 1024       # v7x per-TC lower bound; safe everywhere


def _plan_tiling(n: int, d: int, itemsize: int, block_n=None):
    d_lane = _round_up(d, 128)
    gram_bytes = 2 * _round_up(d, 8) * d_lane * 4          # two f32 DxD Grams
    vec_bytes = 3 * 8 * d_lane * 4                         # (1,D) pads to (8,D_lane)
    resident = gram_bytes + vec_bytes + 8 * 128 * 4        # + padded output tile

    capacity = _tpu_vmem_capacity()
    headroom = max(6 * 1024 * 1024, gram_bytes // 2)       # finalize / compiler scratch

    if block_n is None:
        # Input double-buffer budget (2 inputs x 2 pipeline buffers), capped so
        # we never ask for more than ~32 MiB even on 128 MiB parts.
        input_budget = min(32 * 1024 * 1024, capacity - resident - headroom)
        input_budget = max(input_budget, 1 * 1024 * 1024)
        row_bytes = 4 * d_lane * itemsize                  # per batch row
        cap_rows = max(8, input_budget // row_bytes)
        block_n = next((c for c in (2048, 1024, 512, 256, 128, 64, 32, 16, 8)
                        if c <= min(n, cap_rows)), None)
        if block_n is None:                                 # n < 8: one full block
            block_n = n
    else:
        block_n = min(int(block_n), n)
        if block_n < n:
            block_n = max(8, (block_n // 8) * 8)            # keep sublane-aligned

    num_tiles = -(-n // block_n)
    inputs_bytes = 4 * block_n * d_lane * itemsize
    vmem_limit = int(min(capacity, resident + inputs_bytes + headroom
                         + 2 * 1024 * 1024))
    vmem_limit = max(vmem_limit, 16 * 1024 * 1024)
    return block_n, num_tiles, vmem_limit


# --------------------------------------------------------------------------- #
# Wrapper
# --------------------------------------------------------------------------- #
def vicreg_loss(pred_state, target_state, *,
                inv_weight: float = 1.0, var_weight: float = 1.0,
                cov_weight: float = 1.0, gamma: float = 1.0,
                block_n: int | None = None):
    assert pred_state.shape == target_state.shape and pred_state.ndim == 2
    n, d = pred_state.shape
    # Unbiased std/cov divide by (n-1); n == 1 degenerates in torch as well.
    assert n >= 2, "VICRegLoss needs at least 2 samples (unbiased std/cov)"

    itemsize = jnp.dtype(pred_state.dtype).itemsize
    block_n, num_tiles, vmem_limit = _plan_tiling(n, d, itemsize, block_n)
    mask_tail = (n % block_n) != 0

    kernel = partial(_vicreg_kernel, gamma=float(gamma), n_total=n, d=d,
                     block_n=block_n, mask_tail=mask_tail)

    out = pl.pallas_call(
        kernel,
        out_shape=jax.ShapeDtypeStruct((1, 128), jnp.float32),
        grid_spec=pltpu.PrefetchScalarGridSpec(
            num_scalar_prefetch=0,
            grid=(num_tiles,),
            in_specs=[pl.BlockSpec((block_n, d), lambda i: (i, 0)),
                      pl.BlockSpec((block_n, d), lambda i: (i, 0))],
            out_specs=pl.BlockSpec((1, 128), lambda i: (0, 0)),
            scratch_shapes=[
                pltpu.VMEM((1, d), jnp.float32),    # sum_x
                pltpu.VMEM((1, d), jnp.float32),    # sum_y
                pltpu.VMEM((1, d), jnp.float32),    # sum((x-y)^2) lane partials
                pltpu.VMEM((d, d), jnp.float32),    # gram_x
                pltpu.VMEM((d, d), jnp.float32),    # gram_y
            ]),
        compiler_params=pltpu.CompilerParams(
            dimension_semantics=("arbitrary",),
            vmem_limit_bytes=vmem_limit),
        cost_estimate=pl.CostEstimate(
            flops=int(4 * n * d * d + 10 * n * d + 8 * d * d),
            transcendentals=int(2 * d),
            bytes_accessed=int(2 * n * d * itemsize + 4 * 128)),
    )(pred_state, target_state)        # native dtype in; cast happens in-kernel

    inv_loss = inv_weight * out[0, 0]
    var_loss = var_weight * (out[0, 1] + out[0, 2]) / 2.0
    cov_loss = cov_weight * (out[0, 3] + out[0, 4]) / 2.0
    metrics = {'inv-loss': inv_loss, 'var-loss': var_loss, 'cov-loss': cov_loss}
    metrics['loss'] = inv_loss + var_loss + cov_loss
    return metrics


# --------------------------------------------------------------------------- #
# Pure-JAX reference mirroring the PyTorch module
# --------------------------------------------------------------------------- #
def _vicreg_loss_ref(x, y, inv_weight=1.0, var_weight=1.0, cov_weight=1.0,
                     gamma=1.0):
    n, d = x.shape

    def var_l(z):
        zc = z - z.mean(axis=0)
        std = jnp.sqrt(jnp.sum(zc * zc, axis=0) / (n - 1))
        return jnp.maximum(gamma - std, 0.0).mean()

    def cov_l(z):
        zc = z - z.mean(axis=0)
        cov = zc.T @ zc / (n - 1)
        cov = cov * (1.0 - jnp.eye(d, dtype=cov.dtype))
        return jnp.sum(cov ** 2) / d

    inv = inv_weight * jnp.mean((x - y) ** 2)
    var = var_weight * (var_l(x) + var_l(y)) / 2.0
    cov = cov_weight * (cov_l(x) + cov_l(y)) / 2.0
    return {'inv-loss': inv, 'var-loss': var, 'cov-loss': cov,
            'loss': inv + var + cov}


if __name__ == "__main__":
    key = jax.random.PRNGKey(0)

    def check(m, r, tag):
        for k in ('inv-loss', 'var-loss', 'cov-loss', 'loss'):
            assert jnp.allclose(m[k], r[k], atol=2e-3, rtol=2e-3), \
                f"[{tag}] mismatch on {k}: {m[k]} vs {r[k]}"

    # ---- small shape matching the module's flat (batch, hidden) layout ----
    k1, k2 = jax.random.split(key)
    N, D = 8, 32
    pred_state = jax.random.normal(k1, (N, D), dtype=jnp.float32)
    target_state = pred_state + 0.1 * jax.random.normal(k2, (N, D),
                                                        dtype=jnp.float32)
    m1 = vicreg_loss(pred_state, target_state, gamma=1.0)
    m1 = jax.tree_util.tree_map(jax.block_until_ready, m1)
    check(m1, _vicreg_loss_ref(pred_state, target_state), "small")

    # ---- exercise the tiled accumulator grid (grid=(4,), explicit block) --
    k3, k4 = jax.random.split(k2)
    N2, D2 = 256, 128
    pred2 = jax.random.normal(k3, (N2, D2), dtype=jnp.float32)
    targ2 = pred2 + 0.05 * jax.random.normal(k4, (N2, D2), dtype=jnp.float32)
    m2 = vicreg_loss(pred2, targ2, gamma=1.0, block_n=64)
    m2 = jax.tree_util.tree_map(jax.block_until_ready, m2)
    check(m2, _vicreg_loss_ref(pred2, targ2), "tiled")

    # ---- exercise the masked tail tile (N not divisible by block_n) -------
    k5, k6 = jax.random.split(k4)
    N3, D3 = 100, 32
    pred3 = jax.random.normal(k5, (N3, D3), dtype=jnp.float32)
    targ3 = pred3 + 0.07 * jax.random.normal(k6, (N3, D3), dtype=jnp.float32)
    m3 = vicreg_loss(pred3, targ3, gamma=1.0)     # auto block_n -> padded tail
    m3 = jax.tree_util.tree_map(jax.block_until_ready, m3)
    check(m3, _vicreg_loss_ref(pred3, targ3), "tail")

    print("KERNEL_OK")
</pallas_src>

<mosaic_0001>
module attributes {stable_mosaic.version = 11 : i64} {
  func.func @_vicreg_kernel(%arg0: i32, %arg1: memref<8x32xf32, #tpu.memory_space<vmem>>, %arg2: memref<8x32xf32, #tpu.memory_space<vmem>>, %arg3: memref<1x128xf32, #tpu.memory_space<vmem>>, %arg4: memref<1x32xf32, #tpu.memory_space<vmem>>, %arg5: memref<1x32xf32, #tpu.memory_space<vmem>>, %arg6: memref<1x32xf32, #tpu.memory_space<vmem>>, %arg7: memref<32x32xf32, #tpu.memory_space<vmem>>, %arg8: memref<32x32xf32, #tpu.memory_space<vmem>>) attributes {dimension_semantics = [#tpu.dimension_semantics<arbitrary>], iteration_bounds = array<i64: 1>, scalar_prefetch = 0 : i64, scratch_operands = 5 : i64, tpu.core_type = #tpu.core_type<tc>, window_params = [{transform_indices = @transform_0, window_bounds = array<i64: 8, 32>}, {transform_indices = @transform_1, window_bounds = array<i64: 8, 32>}, {pipeline_mode = #tpu.pipeline_mode<synchronous>, transform_indices = @transform_2, window_bounds = array<i64: 1, 128>}]} {
    %c0_i32 = arith.constant 0 : i32
    %0 = arith.cmpi eq, %arg0, %c0_i32 : i32
    %1 = arith.extui %0 : i1 to i32
    %c0_i32_0 = arith.constant 0 : i32
    %2 = arith.cmpi ne, %1, %c0_i32_0 : i32
    scf.if %2 {
      %cst_30 = arith.constant 0.000000e+00 : f32
      %33 = vector.broadcast %cst_30 : f32 to vector<1x32xf32>
      %c0_31 = arith.constant 0 : index
      %c0_32 = arith.constant 0 : index
      %34 = vector.load %arg4[%c0_31, %c0_32] : memref<1x32xf32, #tpu.memory_space<vmem>>, vector<1x32xf32>
      tpu.vector_store %arg4[%c0_31, %c0_32], %33 {strides = array<i32>} : memref<1x32xf32, #tpu.memory_space<vmem>>, vector<1x32xf32>,
      %cst_33 = arith.constant 0.000000e+00 : f32
      %35 = vector.broadcast %cst_33 : f32 to vector<1x32xf32>
      %c0_34 = arith.constant 0 : index
      %c0_35 = arith.constant 0 : index
      %36 = vector.load %arg5[%c0_34, %c0_35] : memref<1x32xf32, #tpu.memory_space<vmem>>, vector<1x32xf32>
      tpu.vector_store %arg5[%c0_34, %c0_35], %35 {strides = array<i32>} : memref<1x32xf32, #tpu.memory_space<vmem>>, vector<1x32xf32>,
      %cst_36 = arith.constant 0.000000e+00 : f32
      %37 = vector.broadcast %cst_36 : f32 to vector<1x32xf32>
      %c0_37 = arith.constant 0 : index
      %c0_38 = arith.constant 0 : index
      %38 = vector.load %arg6[%c0_37, %c0_38] : memref<1x32xf32, #tpu.memory_space<vmem>>, vector<1x32xf32>
      tpu.vector_store %arg6[%c0_37, %c0_38], %37 {strides = array<i32>} : memref<1x32xf32, #tpu.memory_space<vmem>>, vector<1x32xf32>,
      %cst_39 = arith.constant 0.000000e+00 : f32
      %39 = vector.broadcast %cst_39 : f32 to vector<32x32xf32>
      %c0_40 = arith.constant 0 : index
      %c0_41 = arith.constant 0 : index
      %40 = vector.load %arg7[%c0_40, %c0_41] : memref<32x32xf32, #tpu.memory_space<vmem>>, vector<32x32xf32>
      tpu.vector_store %arg7[%c0_40, %c0_41], %39 {strides = array<i32>} : memref<32x32xf32, #tpu.memory_space<vmem>>, vector<32x32xf32>,
      %cst_42 = arith.constant 0.000000e+00 : f32
      %41 = vector.broadcast %cst_42 : f32 to vector<32x32xf32>
      %c0_43 = arith.constant 0 : index
      %c0_44 = arith.constant 0 : index
      %42 = vector.load %arg8[%c0_43, %c0_44] : memref<32x32xf32, #tpu.memory_space<vmem>>, vector<32x32xf32>
      tpu.vector_store %arg8[%c0_43, %c0_44], %41 {strides = array<i32>} : memref<32x32xf32, #tpu.memory_space<vmem>>, vector<32x32xf32>,
    } else {
    }
    %c0 = arith.constant 0 : index
    %c0_1 = arith.constant 0 : index
    %3 = vector.load %arg1[%c0, %c0_1] : memref<8x32xf32, #tpu.memory_space<vmem>>, vector<8x32xf32>
    %c0_2 = arith.constant 0 : index
    %c0_3 = arith.constant 0 : index
    %4 = vector.load %arg2[%c0_2, %c0_3] : memref<8x32xf32, #tpu.memory_space<vmem>>, vector<8x32xf32>
    %5 = arith.subf %3, %4 : vector<8x32xf32>
    %c0_4 = arith.constant 0 : index
    %c0_5 = arith.constant 0 : index
    %6 = vector.load %arg6[%c0_4, %c0_5] : memref<1x32xf32, #tpu.memory_space<vmem>>, vector<1x32xf32>
    %7 = arith.mulf %5, %5 : vector<8x32xf32>
    %cst = arith.constant dense<0.000000e+00> : vector<32xf32>
    %8 = vector.multi_reduction <add>, %7, %cst [0] : vector<8x32xf32> to vector<32xf32>
    %9 = vector.shape_cast %8 : vector<32xf32> to vector<1x32xf32>
    %10 = arith.addf %6, %9 : vector<1x32xf32>
    %c0_6 = arith.constant 0 : index
    %c0_7 = arith.constant 0 : index
    %11 = vector.load %arg6[%c0_6, %c0_7] : memref<1x32xf32, #tpu.memory_space<vmem>>, vector<1x32xf32>
    tpu.vector_store %arg6[%c0_6, %c0_7], %10 {strides = array<i32>} : memref<1x32xf32, #tpu.memory_space<vmem>>, vector<1x32xf32>,
    %c0_8 = arith.constant 0 : index
    %c0_9 = arith.constant 0 : index
    %12 = vector.load %arg4[%c0_8, %c0_9] : memref<1x32xf32, #tpu.memory_space<vmem>>, vector<1x32xf32>
    %cst_10 = arith.constant dense<0.000000e+00> : vector<32xf32>
    %13 = vector.multi_reduction <add>, %3, %cst_10 [0] : vector<8x32xf32> to vector<32xf32>
    %14 = vector.shape_cast %13 : vector<32xf32> to vector<1x32xf32>
    %15 = arith.addf %12, %14 : vector<1x32xf32>
    %c0_11 = arith.constant 0 : index
    %c0_12 = arith.constant 0 : index
    %16 = vector.load %arg4[%c0_11, %c0_12] : memref<1x32xf32, #tpu.memory_space<vmem>>, vector<1x32xf32>
    tpu.vector_store %arg4[%c0_11, %c0_12], %15 {strides = array<i32>} : memref<1x32xf32, #tpu.memory_space<vmem>>, vector<1x32xf32>,
    %c0_13 = arith.constant 0 : index
    %c0_14 = arith.constant 0 : index
    %17 = vector.load %arg5[%c0_13, %c0_14] : memref<1x32xf32, #tpu.memory_space<vmem>>, vector<1x32xf32>
    %cst_15 = arith.constant dense<0.000000e+00> : vector<32xf32>
    %18 = vector.multi_reduction <add>, %4, %cst_15 [0] : vector<8x32xf32> to vector<32xf32>
    %19 = vector.shape_cast %18 : vector<32xf32> to vector<1x32xf32>
    %20 = arith.addf %17, %19 : vector<1x32xf32>
    %c0_16 = arith.constant 0 : index
    %c0_17 = arith.constant 0 : index
    %21 = vector.load %arg5[%c0_16, %c0_17] : memref<1x32xf32, #tpu.memory_space<vmem>>, vector<1x32xf32>
    tpu.vector_store %arg5[%c0_16, %c0_17], %20 {strides = array<i32>} : memref<1x32xf32, #tpu.memory_space<vmem>>, vector<1x32xf32>,
    %c0_18 = arith.constant 0 : index
    %c0_19 = arith.constant 0 : index
    %22 = vector.load %arg7[%c0_18, %c0_19] : memref<32x32xf32, #tpu.memory_space<vmem>>, vector<32x32xf32>
    %cst_20 = arith.constant dense<0.000000e+00> : vector<32x32xf32>
    %23 = tpu.matmul %3, %3, %cst_20 {dimension_numbers = #tpu.dot_dimension_numbers<[0], [0], [1], [1], [0, 1, 1, 1], [], []>} : vector<8x32xf32>, vector<8x32xf32>, vector<32x32xf32> -> vector<32x32xf32>
    %24 = arith.addf %22, %23 : vector<32x32xf32>
    %c0_21 = arith.constant 0 : index
    %c0_22 = arith.constant 0 : index
    %25 = vector.load %arg7[%c0_21, %c0_22] : memref<32x32xf32, #tpu.memory_space<vmem>>, vector<32x32xf32>
    tpu.vector_store %arg7[%c0_21, %c0_22], %24 {strides = array<i32>} : memref<32x32xf32, #tpu.memory_space<vmem>>, vector<32x32xf32>,
    %c0_23 = arith.constant 0 : index
    %c0_24 = arith.constant 0 : index
    %26 = vector.load %arg8[%c0_23, %c0_24] : memref<32x32xf32, #tpu.memory_space<vmem>>, vector<32x32xf32>
    %cst_25 = arith.constant dense<0.000000e+00> : vector<32x32xf32>
    %27 = tpu.matmul %4, %4, %cst_25 {dimension_numbers = #tpu.dot_dimension_numbers<[0], [0], [1], [1], [0, 1, 1, 1], [], []>} : vector<8x32xf32>, vector<8x32xf32>, vector<32x32xf32> -> vector<32x32xf32>
    %28 = arith.addf %26, %27 : vector<32x32xf32>
    %c0_26 = arith.constant 0 : index
    %c0_27 = arith.constant 0 : index
    %29 = vector.load %arg8[%c0_26, %c0_27] : memref<32x32xf32, #tpu.memory_space<vmem>>, vector<32x32xf32>
    tpu.vector_store %arg8[%c0_26, %c0_27], %28 {strides = array<i32>} : memref<32x32xf32, #tpu.memory_space<vmem>>, vector<32x32xf32>,
    %c0_i32_28 = arith.constant 0 : i32
    %30 = arith.cmpi eq, %arg0, %c0_i32_28 : i32
    %31 = arith.extui %30 : i1 to i32
    %c0_i32_29 = arith.constant 0 : i32
    %32 = arith.cmpi ne, %31, %c0_i32_29 : i32
    scf.if %32 {
      %c0_30 = arith.constant 0 : index
      %c0_31 = arith.constant 0 : index
      %33 = vector.load %arg6[%c0_30, %c0_31] : memref<1x32xf32, #tpu.memory_space<vmem>>, vector<1x32xf32>
      %34 = vector.shape_cast %33 : vector<1x32xf32> to vector<1x1x32xf32>
      %cst_32 = arith.constant dense<0.000000e+00> : vector<1xf32>
      %35 = vector.multi_reduction <add>, %34, %cst_32 [1, 2] : vector<1x1x32xf32> to vector<1xf32>
      %36 = vector.shape_cast %35 : vector<1xf32> to vector<1x1x1xf32>
      %37 = vector.extract %36[0, 0, 0] : f32 from vector<1x1x1xf32>
      %cst_33 = arith.constant 3.906250e-03 : f32
      %38 = arith.mulf %37, %cst_33 : f32
      %39 = tpu.iota {dimensions = array<i32: 0>} : vector<32x32xi32>
      %40 = tpu.iota {dimensions = array<i32: 1>} : vector<32x32xi32>
      %41 = arith.cmpi eq, %39, %40 : vector<32x32xi32>
      %42 = tpu.iota {dimensions = array<i32: 0>} : vector<8x32xi32>
      %c0_34 = arith.constant 0 : index
      %c0_35 = arith.constant 0 : index
      %43 = vector.load %arg7[%c0_34, %c0_35] : memref<32x32xf32, #tpu.memory_space<vmem>>, vector<32x32xf32>
      %c0_36 = arith.constant 0 : index
      %c0_37 = arith.constant 0 : index
      %44 = vector.load %arg4[%c0_36, %c0_37] : memref<1x32xf32, #tpu.memory_space<vmem>>, vector<1x32xf32>
      %cst_38 = arith.constant 1.250000e-01 : f32
      %45 = vector.broadcast %cst_38 : f32 to vector<1x32xf32>
      %46 = arith.mulf %44, %45 : vector<1x32xf32>
      %cst_39 = arith.constant 0.000000e+00 : f32
      %47 = vector.broadcast %cst_39 : f32 to vector<32x32xf32>
      %48 = arith.select %41, %43, %47 : vector<32x32xi1>, vector<32x32xf32>
      %cst_40 = arith.constant dense<0.000000e+00> : vector<32xf32>
      %49 = vector.multi_reduction <add>, %48, %cst_40 [0] : vector<32x32xf32> to vector<32xf32>
      %50 = vector.shape_cast %49 : vector<32xf32> to vector<1x32xf32>
      %cst_41 = arith.constant 8.000000e+00 : f32
      %51 = vector.broadcast %cst_41 : f32 to vector<1x32xf32>
      %52 = arith.mulf %51, %46 : vector<1x32xf32>
      %53 = arith.mulf %52, %46 : vector<1x32xf32>
      %54 = arith.subf %50, %53 : vector<1x32xf32>
      %cst_42 = arith.constant 0.142857149 : f32
      %55 = vector.broadcast %cst_42 : f32 to vector<1x32xf32>
      %56 = arith.mulf %54, %55 : vector<1x32xf32>
      %cst_43 = arith.constant 0.000000e+00 : f32
      %57 = vector.broadcast %cst_43 : f32 to vector<1x32xf32>
      %58 = arith.maximumf %56, %57 : vector<1x32xf32>
      %59 = math.sqrt %58 : vector<1x32xf32>
      %cst_44 = arith.constant 1.000000e+00 : f32
      %60 = vector.broadcast %cst_44 : f32 to vector<1x32xf32>
      %61 = arith.subf %60, %59 : vector<1x32xf32>
      %cst_45 = arith.constant 0.000000e+00 : f32
      %62 = vector.broadcast %cst_45 : f32 to vector<1x32xf32>
      %63 = arith.maximumf %61, %62 : vector<1x32xf32>
      %64 = vector.shape_cast %63 : vector<1x32xf32> to vector<1x1x32xf32>
      %cst_46 = arith.constant dense<0.000000e+00> : vector<1xf32>
      %65 = vector.multi_reduction <add>, %64, %cst_46 [1, 2] : vector<1x1x32xf32> to vector<1xf32>
      %66 = vector.shape_cast %65 : vector<1xf32> to vector<1x1x1xf32>
      %67 = vector.extract %66[0, 0, 0] : f32 from vector<1x1x1xf32>
      %cst_47 = arith.constant 3.200000e+01 : f32
      %68 = arith.divf %67, %cst_47 : f32
      %69 = arith.mulf %43, %43 : vector<32x32xf32>
      %70 = vector.shape_cast %69 : vector<32x32xf32> to vector<1x32x32xf32>
      %cst_48 = arith.constant dense<0.000000e+00> : vector<1xf32>
      %71 = vector.multi_reduction <add>, %70, %cst_48 [1, 2] : vector<1x32x32xf32> to vector<1xf32>
      %72 = vector.shape_cast %71 : vector<1xf32> to vector<1x1x1xf32>
      %73 = vector.extract %72[0, 0, 0] : f32 from vector<1x1x1xf32>
      %c0_i32_49 = arith.constant 0 : i32
      %74 = vector.broadcast %c0_i32_49 : i32 to vector<8x32xi32>
      %75 = arith.cmpi eq, %42, %74 : vector<8x32xi32>
      %cst_50 = arith.constant 0.000000e+00 : f32
      %76 = vector.shape_cast %46 : vector<1x32xf32> to vector<1x32xf32>
      %77 = vector.broadcast %76 : vector<1x32xf32> to vector<8x32xf32>
      %78 = vector.broadcast %cst_50 : f32 to vector<8x32xf32>
      %79 = arith.select %75, %77, %78 : vector<8x32xi1>, vector<8x32xf32>
      %cst_51 = arith.constant dense<0.000000e+00> : vector<8x32xf32>
      %80 = tpu.matmul %79, %43, %cst_51 {dimension_numbers = #tpu.dot_dimension_numbers<[1], [0], [0], [1], [0, 0, 1, 1], [], []>} : vector<8x32xf32>, vector<32x32xf32>, vector<8x32xf32> -> vector<8x32xf32>
      %81 = arith.mulf %80, %79 : vector<8x32xf32>
      %82 = vector.shape_cast %81 : vector<8x32xf32> to vector<1x8x32xf32>
      %cst_52 = arith.constant dense<0.000000e+00> : vector<1xf32>
      %83 = vector.multi_reduction <add>, %82, %cst_52 [1, 2] : vector<1x8x32xf32> to vector<1xf32>
      %84 = vector.shape_cast %83 : vector<1xf32> to vector<1x1x1xf32>
      %85 = vector.extract %84[0, 0, 0] : f32 from vector<1x1x1xf32>
      %86 = arith.mulf %46, %46 : vector<1x32xf32>
      %87 = vector.shape_cast %86 : vector<1x32xf32> to vector<1x1x32xf32>
      %cst_53 = arith.constant dense<0.000000e+00> : vector<1xf32>
      %88 = vector.multi_reduction <add>, %87, %cst_53 [1, 2] : vector<1x1x32xf32> to vector<1xf32>
      %89 = vector.shape_cast %88 : vector<1xf32> to vector<1x1x1xf32>
      %90 = vector.extract %89[0, 0, 0] : f32 from vector<1x1x1xf32>
      %cst_54 = arith.constant 1.600000e+01 : f32
      %91 = arith.mulf %cst_54, %85 : f32
      %92 = arith.subf %73, %91 : f32
      %cst_55 = arith.constant 6.400000e+01 : f32
      %93 = arith.mulf %cst_55, %90 : f32
      %94 = arith.mulf %93, %90 : f32
      %95 = arith.addf %92, %94 : f32
      %cst_56 = arith.constant 0.0204081628 : f32
      %96 = arith.mulf %95, %cst_56 : f32
      %97 = arith.mulf %56, %56 : vector<1x32xf32>
      %98 = vector.shape_cast %97 : vector<1x32xf32> to vector<1x1x32xf32>
      %cst_57 = arith.constant dense<0.000000e+00> : vector<1xf32>
      %99 = vector.multi_reduction <add>, %98, %cst_57 [1, 2] : vector<1x1x32xf32> to vector<1xf32>
      %100 = vector.shape_cast %99 : vector<1xf32> to vector<1x1x1xf32>
      %101 = vector.extract %100[0, 0, 0] : f32 from vector<1x1x1xf32>
      %102 = arith.subf %96, %101 : f32
      %cst_58 = arith.constant 3.125000e-02 : f32
      %103 = arith.mulf %102, %cst_58 : f32
      %c0_59 = arith.constant 0 : index
      %c0_60 = arith.constant 0 : index
      %104 = vector.load %arg8[%c0_59, %c0_60] : memref<32x32xf32, #tpu.memory_space<vmem>>, vector<32x32xf32>
      %c0_61 = arith.constant 0 : index
      %c0_62 = arith.constant 0 : index
      %105 = vector.load %arg5[%c0_61, %c0_62] : memref<1x32xf32, #tpu.memory_space<vmem>>, vector<1x32xf32>
      %cst_63 = arith.constant 1.250000e-01 : f32
      %106 = vector.broadcast %cst_63 : f32 to vector<1x32xf32>
      %107 = arith.mulf %105, %106 : vector<1x32xf32>
      %cst_64 = arith.constant 0.000000e+00 : f32
      %108 = vector.broadcast %cst_64 : f32 to vector<32x32xf32>
      %109 = arith.select %41, %104, %108 : vector<32x32xi1>, vector<32x32xf32>
      %cst_65 = arith.constant dense<0.000000e+00> : vector<32xf32>
      %110 = vector.multi_reduction <add>, %109, %cst_65 [0] : vector<32x32xf32> to vector<32xf32>
      %111 = vector.shape_cast %110 : vector<32xf32> to vector<1x32xf32>
      %cst_66 = arith.constant 8.000000e+00 : f32
      %112 = vector.broadcast %cst_66 : f32 to vector<1x32xf32>
      %113 = arith.mulf %112, %107 : vector<1x32xf32>
      %114 = arith.mulf %113, %107 : vector<1x32xf32>
      %115 = arith.subf %111, %114 : vector<1x32xf32>
      %cst_67 = arith.constant 0.142857149 : f32
      %116 = vector.broadcast %cst_67 : f32 to vector<1x32xf32>
      %117 = arith.mulf %115, %116 : vector<1x32xf32>
      %cst_68 = arith.constant 0.000000e+00 : f32
      %118 = vector.broadcast %cst_68 : f32 to vector<1x32xf32>
      %119 = arith.maximumf %117, %118 : vector<1x32xf32>
      %120 = math.sqrt %119 : vector<1x32xf32>
      %cst_69 = arith.constant 1.000000e+00 : f32
      %121 = vector.broadcast %cst_69 : f32 to vector<1x32xf32>
      %122 = arith.subf %121, %120 : vector<1x32xf32>
      %cst_70 = arith.constant 0.000000e+00 : f32
      %123 = vector.broadcast %cst_70 : f32 to vector<1x32xf32>
      %124 = arith.maximumf %122, %123 : vector<1x32xf32>
      %125 = vector.shape_cast %124 : vector<1x32xf32> to vector<1x1x32xf32>
      %cst_71 = arith.constant dense<0.000000e+00> : vector<1xf32>
      %126 = vector.multi_reduction <add>, %125, %cst_71 [1, 2] : vector<1x1x32xf32> to vector<1xf32>
      %127 = vector.shape_cast %126 : vector<1xf32> to vector<1x1x1xf32>
      %128 = vector.extract %127[0, 0, 0] : f32 from vector<1x1x1xf32>
      %cst_72 = arith.constant 3.200000e+01 : f32
      %129 = arith.divf %128, %cst_72 : f32
      %130 = arith.mulf %104, %104 : vector<32x32xf32>
      %131 = vector.shape_cast %130 : vector<32x32xf32> to vector<1x32x32xf32>
      %cst_73 = arith.constant dense<0.000000e+00> : vector<1xf32>
      %132 = vector.multi_reduction <add>, %131, %cst_73 [1, 2] : vector<1x32x32xf32> to vector<1xf32>
      %133 = vector.shape_cast %132 : vector<1xf32> to vector<1x1x1xf32>
      %134 = vector.extract %133[0, 0, 0] : f32 from vector<1x1x1xf32>
      %c0_i32_74 = arith.constant 0 : i32
      %135 = vector.broadcast %c0_i32_74 : i32 to vector<8x32xi32>
      %136 = arith.cmpi eq, %42, %135 : vector<8x32xi32>
      %cst_75 = arith.constant 0.000000e+00 : f32
      %137 = vector.shape_cast %107 : vector<1x32xf32> to vector<1x32xf32>
      %138 = vector.broadcast %137 : vector<1x32xf32> to vector<8x32xf32>
      %139 = vector.broadcast %cst_75 : f32 to vector<8x32xf32>
      %140 = arith.select %136, %138, %139 : vector<8x32xi1>, vector<8x32xf32>
      %cst_76 = arith.constant dense<0.000000e+00> : vector<8x32xf32>
      %141 = tpu.matmul %140, %104, %cst_76 {dimension_numbers = #tpu.dot_dimension_numbers<[1], [0], [0], [1], [0, 0, 1, 1], [], []>} : vector<8x32xf32>, vector<32x32xf32>, vector<8x32xf32> -> vector<8x32xf32>
      %142 = arith.mulf %141, %140 : vector<8x32xf32>
      %143 = vector.shape_cast %142 : vector<8x32xf32> to vector<1x8x32xf32>
      %cst_77 = arith.constant dense<0.000000e+00> : vector<1xf32>
      %144 = vector.multi_reduction <add>, %143, %cst_77 [1, 2] : vector<1x8x32xf32> to vector<1xf32>
      %145 = vector.shape_cast %144 : vector<1xf32> to vector<1x1x1xf32>
      %146 = vector.extract %145[0, 0, 0] : f32 from vector<1x1x1xf32>
      %147 = arith.mulf %107, %107 : vector<1x32xf32>
      %148 = vector.shape_cast %147 : vector<1x32xf32> to vector<1x1x32xf32>
      %cst_78 = arith.constant dense<0.000000e+00> : vector<1xf32>
      %149 = vector.multi_reduction <add>, %148, %cst_78 [1, 2] : vector<1x1x32xf32> to vector<1xf32>
      %150 = vector.shape_cast %149 : vector<1xf32> to vector<1x1x1xf32>
      %151 = vector.extract %150[0, 0, 0] : f32 from vector<1x1x1xf32>
      %cst_79 = arith.constant 1.600000e+01 : f32
      %152 = arith.mulf %cst_79, %146 : f32
      %153 = arith.subf %134, %152 : f32
      %cst_80 = arith.constant 6.400000e+01 : f32
      %154 = arith.mulf %cst_80, %151 : f32
      %155 = arith.mulf %154, %151 : f32
      %156 = arith.addf %153, %155 : f32
      %cst_81 = arith.constant 0.0204081628 : f32
      %157 = arith.mulf %156, %cst_81 : f32
      %158 = arith.mulf %117, %117 : vector<1x32xf32>
      %159 = vector.shape_cast %158 : vector<1x32xf32> to vector<1x1x32xf32>
      %cst_82 = arith.constant dense<0.000000e+00> : vector<1xf32>
      %160 = vector.multi_reduction <add>, %159, %cst_82 [1, 2] : vector<1x1x32xf32> to vector<1xf32>
      %161 = vector.shape_cast %160 : vector<1xf32> to vector<1x1x1xf32>
      %162 = vector.extract %161[0, 0, 0] : f32 from vector<1x1x1xf32>
      %163 = arith.subf %157, %162 : f32
      %cst_83 = arith.constant 3.125000e-02 : f32
      %164 = arith.mulf %163, %cst_83 : f32
      %165 = tpu.iota {dimensions = array<i32: 1>} : vector<1x128xi32>
      %c0_i32_84 = arith.constant 0 : i32
      %166 = vector.broadcast %c0_i32_84 : i32 to vector<1x128xi32>
      %167 = arith.cmpi eq, %165, %166 : vector<1x128xi32>
      %cst_85 = arith.constant 0.000000e+00 : f32
      %168 = vector.broadcast %38 : f32 to vector<1x128xf32>
      %169 = vector.broadcast %cst_85 : f32 to vector<1x128xf32>
      %170 = arith.select %167, %168, %169 : vector<1x128xi1>, vector<1x128xf32>
      %c1_i32 = arith.constant 1 : i32
      %171 = vector.broadcast %c1_i32 : i32 to vector<1x128xi32>
      %172 = arith.cmpi eq, %165, %171 : vector<1x128xi32>
      %cst_86 = arith.constant 0.000000e+00 : f32
      %173 = vector.broadcast %68 : f32 to vector<1x128xf32>
      %174 = vector.broadcast %cst_86 : f32 to vector<1x128xf32>
      %175 = arith.select %172, %173, %174 : vector<1x128xi1>, vector<1x128xf32>
      %176 = arith.addf %170, %175 : vector<1x128xf32>
      %c2_i32 = arith.constant 2 : i32
      %177 = vector.broadcast %c2_i32 : i32 to vector<1x128xi32>
      %178 = arith.cmpi eq, %165, %177 : vector<1x128xi32>
      %cst_87 = arith.constant 0.000000e+00 : f32
      %179 = vector.broadcast %129 : f32 to vector<1x128xf32>
      %180 = vector.broadcast %cst_87 : f32 to vector<1x128xf32>
      %181 = arith.select %178, %179, %180 : vector<1x128xi1>, vector<1x128xf32>
      %182 = arith.addf %176, %181 : vector<1x128xf32>
      %c3_i32 = arith.constant 3 : i32
      %183 = vector.broadcast %c3_i32 : i32 to vector<1x128xi32>
      %184 = arith.cmpi eq, %165, %183 : vector<1x128xi32>
      %cst_88 = arith.constant 0.000000e+00 : f32
      %185 = vector.broadcast %103 : f32 to vector<1x128xf32>
      %186 = vector.broadcast %cst_88 : f32 to vector<1x128xf32>
      %187 = arith.select %184, %185, %186 : vector<1x128xi1>, vector<1x128xf32>
      %188 = arith.addf %182, %187 : vector<1x128xf32>
      %c4_i32 = arith.constant 4 : i32
      %189 = vector.broadcast %c4_i32 : i32 to vector<1x128xi32>
      %190 = arith.cmpi eq, %165, %189 : vector<1x128xi32>
      %cst_89 = arith.constant 0.000000e+00 : f32
      %191 = vector.broadcast %164 : f32 to vector<1x128xf32>
      %192 = vector.broadcast %cst_89 : f32 to vector<1x128xf32>
      %193 = arith.select %190, %191, %192 : vector<1x128xi1>, vector<1x128xf32>
      %194 = arith.addf %188, %193 : vector<1x128xf32>
      %c0_90 = arith.constant 0 : index
      %c0_91 = arith.constant 0 : index
      %195 = vector.load %arg3[%c0_90, %c0_91] : memref<1x128xf32, #tpu.memory_space<vmem>>, vector<1x128xf32>
      tpu.vector_store %arg3[%c0_90, %c0_91], %194 {strides = array<i32>} : memref<1x128xf32, #tpu.memory_space<vmem>>, vector<1x128xf32>,
    } else {
    }
    return
  }
  func.func @transform_0(%arg0: i32) -> (i32, i32) {
    %c0_i32 = arith.constant 0 : i32
    %c0_i32_0 = arith.constant 0 : i32
    return %arg0, %c0_i32 : i32, i32
  }
  func.func @transform_1(%arg0: i32) -> (i32, i32) {
    %c0_i32 = arith.constant 0 : i32
    %c0_i32_0 = arith.constant 0 : i32
    return %arg0, %c0_i32 : i32, i32
  }
  func.func @transform_2(%arg0: i32) -> (i32, i32) {
    %c0_i32 = arith.constant 0 : i32
    %c0_i32_0 = arith.constant 0 : i32
    %c0_i32_1 = arith.constant 0 : i32
    return %c0_i32, %c0_i32_0 : i32, i32
  }
}

</mosaic_0001>

<bundles_post_ra>
// kernel: tpu_custom_call.1
= control target key start
LH: loop header
LB: loop body
LE: loop exit
PB: predicated region body
PF: predicated region fallthrough
CT: control target
= control target key end

     0   :  { %7 = vsyncpa [#allocation8], 0  ;;  %s915_s0 = inlined_call_operand.hbm [shape: f32[8,32], index: 0, kind: input, shape index: {}]   ;;  %s916_s1 = inlined_call_operand.hbm [shape: f32[8,32], index: 1, kind: input, shape index: {}]   ;;  %s917_s2 = inlined_call_operand.hbm [shape: f32[1,128], index: 2, kind: output, shape index: {}]  }
   0x1   :  { %8 = vsyncpa [#allocation11], 0 }
   0x2   :  { %9 = vsyncpa [#allocation9], 0  ;;  %s15_s11 = sshll.u32 %s915_s0, 4  ;;  %s752_s12 = smov [#allocation7]   ;;  %s16_s11 = int_to_ptr.hbm [resolvable:$true] %s15_s11 }
   0x3   :  { %s17_s13 = sshll.u32 %s752_s12, 4  ;;  %s26_s16 = sshll.u32 %s916_s1, 4  ;;  %s18_s13 = int_to_ptr.vmem [resolvable:$true] %s17_s13  ;;  %s27_s16 = int_to_ptr.hbm [resolvable:$true] %s26_s16 }
   0x4   :  { %20 = dma.hbm_to_vmem [thread:$0]  %s16_s11, 128, %s18_s13, [#allocation8]  }
   0x5   :  { %s753_s17 = smov [#allocation10]  }
   0x6   :  { %s28_s18 = sshll.u32 %s753_s17, 4  ;;  %s29_s18 = int_to_ptr.vmem [resolvable:$true] %s28_s18 }
   0x7   :  { %31 = dma.hbm_to_vmem [thread:$0]  %s27_s16, 128, %s29_s18, [#allocation11]  }
   0x8   :  { %746 = dma.done.wait [#allocation8], 128  }
   0x9   :  { %747 = vsyncadd [#allocation8], 4294967168 }
   0xa   :  { %748 = dma.done.wait [#allocation11], 128  }
   0xb   :  { %749 = vsyncadd [#allocation11], 4294967168  ;;  %vm44_vm0 = vcmask 253952   ;;  %vm48_vm1 = vcmask 261120   ;;  %v754_v0 = vmov 0.0   ;;  %v57_v1 = vld [vmem:[#allocation7] sm:$0xff]  ;;  %v279_v49 = vlaneseq }
   0xc   :  { %45 = vst.msk [vmem:[#allocation2] sm:$0x1] %vm44_vm0, %v754_v0  ;;  %v58_v2 = vld [vmem:[#allocation10] sm:$0xff]  ;;  %97 = vxpose.xlu0.b32.start.end [1/1] (short) (narrow) %v57_v1, 32  ;;  %v74_v3 = vsel %vm48_vm1, %v57_v1, 0.0  ;;  %157 = vmatpush.msra.mxu0 %v57_v1  ;;  %vm129_vm2 = vcmask 64512  }
   0xd   :  { %46 = vst.msk [vmem:[#allocation3] sm:$0x1] %vm44_vm0, %v754_v0  ;;  %v84_v4 = vsel %vm48_vm1, %v58_v2, 0.0  ;;  %v59_v5 = vsub.f32 %v57_v1, %v58_v2  ;;  %v75_v6 = vrot.slane %v74_v3, 4  ;;  %637 = vmatpush.msra.mxu2 %v57_v1  ;;  %242 = vmatpush.msra.mxu1 %v58_v2  ;;  %v806_v50 = vshrl.u32 %v279_v49, 7 }
   0xe   :  { %47 = vst.msk [vmem:[#allocation4] sm:$0x1] %vm44_vm0, %v754_v0  ;;  %v85_v7 = vrot.slane %v84_v4, 4  ;;  %638 = vmatpush.msra.mxu3 %v58_v2  ;;  %v811_v53 = vand.u32 127, %v279_v49 }
   0xf   :  { %49 = vst.msk [vmem:[#allocation5] sm:$0xff] %vm48_vm1, %v754_v0  ;;  %v61_v8 = vmul.f32 %v59_v5, %v59_v5  ;;  %v76_v9 = vadd.f32 %v75_v6, %v74_v3  ;;  %v809_v51 = vadd.s32 8, %v806_v50  ;;  %v814_v54 = vadd.s32 16, %v806_v50 }
  0x10   :  { %50 = vst.msk [vmem:[#allocation5 + $0x8] sm:$0xff] %vm48_vm1, %v754_v0  ;;  %v86_v10 = vadd.f32 %v85_v7, %v84_v4  ;;  %vm286_vm5 = vcmp.eq.s32.totalorder %v806_v50, %v811_v53  ;;  %vm371_vm7 = vcmp.eq.s32.totalorder %v806_v50, 0  ;;  %vm589_vm13 = vcmp.eq.s32.totalorder %v811_v53, 0 }
  0x11   :  { %51 = vst.msk [vmem:[#allocation5 + $0x10] sm:$0xff] %vm48_vm1, %v754_v0  ;;  %v63_v11 = vsel %vm48_vm1, %v61_v8, 0.0  ;;  %v77_v12 = vrot.slane %v76_v9, 2  ;;  %vm287_vm3 = vcmp.eq.s32.totalorder %v809_v51, %v811_v53  ;;  %vm288_vm4 = vcmp.eq.s32.totalorder %v814_v54, %v811_v53 }
  0x12   :  { %52 = vst.msk [vmem:[#allocation5 + $0x18] sm:$0xff] %vm48_vm1, %v754_v0  ;;  %v87_v13 = vrot.slane %v86_v10, 2  ;;  %v64_v14 = vrot.slane %v63_v11, 4  ;;  %vm592_vm14 = vcmp.eq.s32.totalorder %v811_v53, 1  ;;  %vm596_vm15 = vcmp.eq.s32.totalorder %v811_v53, 2 }
  0x13   :  { %53 = vst.msk [vmem:[#allocation6] sm:$0xff] %vm48_vm1, %v754_v0  ;;  %v78_v15 = vadd.f32 %v77_v12, %v76_v9  ;;  %v73_v21 = vld [vmem:[#allocation2] sm:$0x1] }
  0x14   :  { %54 = vst.msk [vmem:[#allocation6 + $0x8] sm:$0xff] %vm48_vm1, %v754_v0  ;;  %v88_v16 = vadd.f32 %v87_v13, %v86_v10  ;;  %v65_v17 = vadd.f32 %v64_v14, %v63_v11  ;;  %v83_v22 = vld [vmem:[#allocation3] sm:$0x1] }
  0x15   :  { %55 = vst.msk [vmem:[#allocation6 + $0x10] sm:$0xff] %vm48_vm1, %v754_v0  ;;  %v79_v18 = vrot.slane %v78_v15, 1  ;;  %v60_v29 = vld [vmem:[#allocation4] sm:$0x1] }
  0x16   :  { %56 = vst.msk [vmem:[#allocation6 + $0x18] sm:$0xff] %vm48_vm1, %v754_v0  ;;  %v89_v19 = vrot.slane %v88_v16, 1  ;;  %v66_v20 = vrot.slane %v65_v17, 2  ;;  %v93_v40 = vld [vmem:[#allocation5] sm:$0xff] }
  0x17   :  { %v80_v23 = vadd.f32 %v79_v18, %v78_v15  ;;  %v94_v43 = vld [vmem:[#allocation5 + $0x8] sm:$0xff] }
  0x18   :  { %v90_v24 = vadd.f32 %v89_v19, %v88_v16  ;;  %v67_v25 = vadd.f32 %v66_v20, %v65_v17  ;;  %v95_v46 = vld [vmem:[#allocation5 + $0x10] sm:$0xff] }
  0x19   :  { %v81_v26 = vadd.f32 %v80_v23, %v73_v21  ;;  %v96_v52 = vld [vmem:[#allocation5 + $0x18] sm:$0xff] }
  0x1a   :  { %v68_v27 = vrot.slane %v67_v25, 1  ;;  %v91_v28 = vadd.f32 %v90_v24, %v83_v22  ;;  %v179_v56 = vld [vmem:[#allocation6] sm:$0xff] }
  0x1b   :  { %82 = vst.msk [vmem:[#allocation2] sm:$0x1] %vm44_vm0, %v81_v26  ;;  %v180_v10 = vld [vmem:[#allocation6 + $0x8] sm:$0xff] }
  0x1c   :  { %v69_v30 = vadd.f32 %v68_v27, %v67_v25  ;;  %92 = vst.msk [vmem:[#allocation3] sm:$0x1] %vm44_vm0, %v91_v28 }
  0x1e   :  { %v70_v31 = vadd.f32 %v69_v30, %v60_v29 }
  0x20   :  { %72 = vst.msk [vmem:[#allocation4] sm:$0x1] %vm44_vm0, %v70_v31 }
  0x22   :  { %v294_v1 = vld [vmem:[#allocation2] sm:$0x1] }
  0x23   :  { %v295_v8 = vmul.f32 0.125, %v294_v1 }
  0x25   :  { %v373_v20 = vperm.slane %v295_v8, 0 }
  0x27   :  { %v267_v16 = vld [vmem:[#allocation4] sm:$0x1] }
  0x28   :  { %v268_v21 = vsel %vm44_vm0, %v267_v16, 0.0 }
  0x29   :  { %269 = vadd.xlane.f32.xlu1 %v268_v21 }
  0x2c   :  { %183 = vxpose.xlu0.b32.start.end [1/1] (short) (narrow) %v58_v2, 32  ;;  %v827_v2 = vadd.s32 24, %v806_v50 }
  0x2e   :  { %vm289_vm6 = vcmp.eq.s32.totalorder %v827_v2, %v811_v53 }
  0xb0   :  { %v113_v32 = vpop.trf.xlu0 }
  0xb1   :  { %627 = vmatmul.msk.f32.vlgmr.msra.gmra.mxu0 %vm129_vm2, %v113_v32  ;;  %v854_v32 = vsel %vm371_vm7, %v373_v20, 0.0 }
  0xb8   :  { %v114_v33 = vpop.trf.xlu0 }
  0xb9   :  { %628 = vmatmul.msk.f32.gmra.mxu0 %vm129_vm2, %v114_v33  ;;  %v181_v33 = vld [vmem:[#allocation6 + $0x10] sm:$0xff] }
  0xc0   :  { %v115_v34 = vpop.trf.xlu0 }
  0xc1   :  { %629 = vmatmul.msk.f32.gmra.mxu0 %vm129_vm2, %v115_v34  ;;  %v410_v34 = vmul.f32 %v295_v8, %v295_v8 }
  0xc8   :  { %v116_v35 = vpop.trf.xlu0 }
  0xc9   :  { %630 = vmatmul.msk.f32.vlgmr.msra.gmra.mxu2 %vm129_vm2, %v116_v35 }
  0xd0   :  { %v199_v36 = vpop.trf.xlu0 }
  0xd1   :  { %631 = vmatmul.msk.f32.vlgmr.msra.gmra.mxu1 %vm129_vm2, %v199_v36 }
  0xd8   :  { %v200_v37 = vpop.trf.xlu0 }
  0xd9   :  { %632 = vmatmul.msk.f32.gmra.mxu1 %vm129_vm2, %v200_v37  ;;  %v411_v37 = vsel %vm44_vm0, %v410_v34, 0.0 }
  0xda   :  { %412 = vadd.xlane.f32.xlu1 %v411_v37 }
  0xe0   :  { %v201_v38 = vpop.trf.xlu0 }
  0xe1   :  { %633 = vmatmul.msk.f32.gmra.mxu1 %vm129_vm2, %v201_v38 }
  0xe8   :  { %v202_v39 = vpop.trf.xlu0 }
  0xe9   :  { %634 = vmatmul.msk.f32.vlgmr.msra.gmra.mxu3 %vm129_vm2, %v202_v39 }
 0x12e   :  { %v159_v41 = vpop.f32.mrf.mxu0 }
 0x12f   :  { %v171_v42 = vadd.f32 %v159_v41, %v93_v40  ;;  %v313_v40 = vmul.f32 8.0, %v295_v8 }
 0x131   :  { %175 = vst.msk [vmem:[#allocation5] sm:$0xff] %vm48_vm1, %v171_v42 }
 0x136   :  { %v162_v44 = vpop.f32.mrf.mxu0 }
 0x137   :  { %v172_v45 = vadd.f32 %v162_v44, %v94_v43  ;;  %v314_v43 = vmul.f32 %v313_v40, %v295_v8 }
 0x138   :  { %v290_v61 = vld [vmem:[#allocation5] sm:$0xff] }
 0x139   :  { %176 = vst.msk [vmem:[#allocation5 + $0x8] sm:$0xff] %vm48_vm1, %v172_v45  ;;  %v296_v5 = vsel %vm286_vm5, %v290_v61, 0.0  ;;  %v351_v6 = vmul.f32 %v290_v61, %v290_v61 }
 0x13a   :  { %v300_v12 = vsel %vm48_vm1, %v296_v5, 0.0 }
 0x13b   :  { %v355_v14 = vsel %vm48_vm1, %v351_v6, 0.0 }
 0x13e   :  { %v165_v47 = vpop.f32.mrf.mxu0 }
 0x13f   :  { %v173_v48 = vadd.f32 %v165_v47, %v95_v46  ;;  %v182_v47 = vld [vmem:[#allocation6 + $0x18] sm:$0xff] }
 0x140   :  { %v291_v57 = vld [vmem:[#allocation5 + $0x8] sm:$0xff] }
 0x141   :  { %177 = vst.msk [vmem:[#allocation5 + $0x10] sm:$0xff] %vm48_vm1, %v173_v48  ;;  %v297_v63 = vsel %vm287_vm3, %v291_v57, 0.0  ;;  %v352_v0 = vmul.f32 %v291_v57, %v291_v57 }
 0x142   :  { %v301_v7 = vsel %vm48_vm1, %v297_v63, 0.0 }
 0x143   :  { %v356_v9 = vsel %vm48_vm1, %v352_v0, 0.0  ;;  %v302_v13 = vadd.f32 %v301_v7, %v300_v12 }
 0x144   :  { %v357_v19 = vadd.f32 %v356_v9, %v355_v14 }
 0x148   :  { %v292_v60 = vld [vmem:[#allocation5 + $0x10] sm:$0xff] }
 0x149   :  { %v298_v3 = vsel %vm288_vm4, %v292_v60, 0.0  ;;  %v353_v4 = vmul.f32 %v292_v60, %v292_v60 }
 0x14a   :  { %v303_v11 = vsel %vm48_vm1, %v298_v3, 0.0 }
 0x14b   :  { %v358_v15 = vsel %vm48_vm1, %v353_v4, 0.0  ;;  %v304_v24 = vadd.f32 %v303_v11, %v302_v13 }
 0x14c   :  { %v168_v55 = vpop.f32.mrf.mxu2  ;;  %v359_v27 = vadd.f32 %v358_v15, %v357_v19 }
 0x14d   :  { %v174_v58 = vadd.f32 %v168_v55, %v96_v52 }
 0x14e   :  { %v244_v59 = vpop.f32.mrf.mxu1 }
 0x14f   :  { %178 = vst.msk [vmem:[#allocation5 + $0x18] sm:$0xff] %vm48_vm1, %v174_v58  ;;  %v256_v62 = vadd.f32 %v244_v59, %v179_v56 }
 0x151   :  { %260 = vst.msk [vmem:[#allocation6] sm:$0xff] %vm48_vm1, %v256_v62 }
 0x156   :  { %v247_v17 = vpop.f32.mrf.mxu1  ;;  %v293_v18 = vld [vmem:[#allocation5 + $0x18] sm:$0xff] }
 0x157   :  { %v257_v22 = vadd.f32 %v247_v17, %v180_v10  ;;  %v299_v23 = vsel %vm289_vm6, %v293_v18, 0.0  ;;  %391 = vmatpush.msrb.mxu2 %v293_v18  ;;  %v354_v25 = vmul.f32 %v293_v18, %v293_v18 }
 0x158   :  { %v305_v26 = vsel %vm48_vm1, %v299_v23, 0.0 }
 0x159   :  { %261 = vst.msk [vmem:[#allocation6 + $0x8] sm:$0xff] %vm48_vm1, %v257_v22  ;;  %392 = vmatpush.msrb.mxu2 %v292_v60  ;;  %v306_v28 = vadd.f32 %v305_v26, %v304_v24  ;;  %v360_v29 = vsel %vm48_vm1, %v354_v25, 0.0  ;;  %v444_v60 = vld [vmem:[#allocation3] sm:$0x1] }
 0x15a   :  { %v361_v30 = vadd.f32 %v360_v29, %v359_v27  ;;  %v872_v5 = vmul.f32 0.125, %v444_v60 }
 0x15b   :  { %v307_v31 = vrot.slane %v306_v28, 4  ;;  %393 = vmatpush.msrb.mxu2 %v291_v57  ;;  %v440_v57 = vld [vmem:[#allocation6] sm:$0xff] }
 0x15c   :  { %362 = vadd.xlane.f32.xlu2 %v361_v30  ;;  %v446_v63 = vsel %vm286_vm5, %v440_v57, 0.0  ;;  %v501_v0 = vmul.f32 %v440_v57, %v440_v57  ;;  %v522_v16 = vperm.slane %v872_v5, 0 }
 0x15d   :  { %394 = vmatpush.msrb.mxu2 %v290_v61  ;;  %v308_v35 = vadd.f32 %v307_v31, %v306_v28  ;;  %v450_v6 = vsel %vm48_vm1, %v446_v63, 0.0  ;;  %v463_v28 = vmul.f32 8.0, %v872_v5 }
 0x15e   :  { %v250_v36 = vpop.f32.mrf.mxu1  ;;  %635 = vmatmul.msk.f32.vlgmr.msrb.gmra.mxu2 %vm48_vm1, %v854_v32  ;;  %v505_v8 = vsel %vm48_vm1, %v501_v0, 0.0  ;;  %v886_v2 = vsel %vm371_vm7, %v522_v16, 0.0  ;;  %v270_v0 = vpop.xlane.xlu1 %269 }
 0x15f   :  { %v258_v38 = vadd.f32 %v250_v36, %v181_v33  ;;  %v309_v39 = vrot.slane %v308_v35, 2 }
 0x160   :  { %v441_v52 = vld [vmem:[#allocation6 + $0x8] sm:$0xff] }
 0x161   :  { %262 = vst.msk [vmem:[#allocation6 + $0x10] sm:$0xff] %vm48_vm1, %v258_v38  ;;  %v310_v41 = vadd.f32 %v309_v39, %v308_v35  ;;  %v447_v58 = vsel %vm287_vm3, %v441_v52, 0.0  ;;  %v502_v59 = vmul.f32 %v441_v52, %v441_v52  ;;  %v464_v38 = vmul.f32 %v463_v28, %v872_v5 }
 0x162   :  { %v451_v1 = vsel %vm48_vm1, %v447_v58, 0.0 }
 0x163   :  { %v311_v42 = vrot.slane %v310_v41, 1  ;;  %v506_v4 = vsel %vm48_vm1, %v502_v59, 0.0  ;;  %v452_v54 = vadd.f32 %v451_v1, %v450_v6  ;;  %v271_v1 = vrot.slane %v270_v0, 4 }
 0x164   :  { %v507_v11 = vadd.f32 %v506_v4, %v505_v8 }
 0x165   :  { %v312_v44 = vadd.f32 %v311_v42, %v310_v41 }
 0x167   :  { %v315_v45 = vsub.f32 %v312_v44, %v314_v43 }
 0x168   :  { %v442_v56 = vld [vmem:[#allocation6 + $0x10] sm:$0xff] }
 0x169   :  { %v316_v46 = vmul.f32 0.14285715, %v315_v45  ;;  %v448_v61 = vsel %vm288_vm4, %v442_v56, 0.0  ;;  %v503_v62 = vmul.f32 %v442_v56, %v442_v56 }
 0x16a   :  { %v453_v51 = vsel %vm48_vm1, %v448_v61, 0.0 }
 0x16b   :  { %v317_v48 = vmax.f32 %v316_v46, 0.0  ;;  %v508_v9 = vsel %vm48_vm1, %v503_v62, 0.0  ;;  %v454_v15 = vadd.f32 %v453_v51, %v452_v54  ;;  %v427_v29 = vmul.f32 %v316_v46, %v316_v46 }
 0x16c   :  { %v253_v49 = vpop.f32.mrf.mxu3  ;;  %v509_v18 = vadd.f32 %v508_v9, %v507_v11  ;;  %v559_v9 = vmul.f32 %v872_v5, %v872_v5 }
 0x16d   :  { %v259_v55 = vadd.f32 %v253_v49, %v182_v47  ;;  %668 = vrsqrt.f32 %v317_v48  ;;  %vm325_vm8 = vcmp.eq.f32.partialorder %v317_v48, inf  ;;  %v328_v30 = vand.u32 2147483648, %v317_v48 }
 0x16e   :  { %vm327_vm9 = vcmp.eq.f32.partialorder %v317_v48, 0.0  ;;  %v428_v36 = vsel %vm44_vm0, %v427_v29, 0.0  ;;  %v560_v11 = vsel %vm44_vm0, %v559_v9, 0.0 }
 0x16f   :  { %263 = vst.msk [vmem:[#allocation6 + $0x18] sm:$0xff] %vm48_vm1, %v259_v55 }
 0x173   :  { %v669_v3 = vpop.eup %668 }
 0x174   :  { %v319_v7 = vmul.f32 %v669_v3, %v317_v48 }
 0x176   :  { %v443_v10 = vld [vmem:[#allocation6 + $0x18] sm:$0xff]  ;;  %v320_v12 = vmul.f32 %v669_v3, %v319_v7 }
 0x177   :  { %v449_v13 = vsel %vm289_vm6, %v443_v10, 0.0  ;;  %v504_v14 = vmul.f32 %v443_v10, %v443_v10  ;;  %540 = vmatpush.msrb.mxu3 %v443_v10 }
 0x178   :  { %v455_v17 = vsel %vm48_vm1, %v449_v13, 0.0  ;;  %v321_v19 = vmul.f32 0.5, %v320_v12  ;;  %v755_v12 = vmov 32.0  }
 0x179   :  { %541 = vmatpush.msrb.mxu3 %v442_v56  ;;  %v456_v20 = vadd.f32 %v455_v17, %v454_v15  ;;  %v510_v21 = vsel %vm48_vm1, %v504_v14, 0.0  ;;  %v413_v14 = vpop.xlane.xlu1 %412 }
 0x17a   :  { %v511_v22 = vadd.f32 %v510_v21, %v509_v18  ;;  %v322_v23 = vsub.f32 1.5, %v321_v19 }
 0x17b   :  { %v457_v24 = vrot.slane %v456_v20, 4  ;;  %542 = vmatpush.msrb.mxu3 %v441_v52 }
 0x17c   :  { %512 = vadd.xlane.f32.xlu2 %v511_v22  ;;  %v323_v25 = vmul.f32 %v669_v3, %v322_v23  ;;  %v272_v3 = vadd.f32 %v271_v1, %v270_v0 }
 0x17d   :  { %543 = vmatpush.msrb.mxu3 %v440_v57  ;;  %v458_v26 = vadd.f32 %v457_v24, %v456_v20 }
 0x17e   :  { %636 = vmatmul.msk.f32.vlgmr.msrb.gmra.mxu3 %vm48_vm1, %v886_v2  ;;  %v324_v27 = vmul.f32 %v323_v25, %v317_v48  ;;  %v273_v4 = vrot.slane %v272_v3, 2 }
 0x17f   :  { %v459_v31 = vrot.slane %v458_v26, 2 }
 0x180   :  { %v326_v33 = vsel %vm325_vm8, %v317_v48, %v324_v27  ;;  %v274_v7 = vadd.f32 %v273_v4, %v272_v3 }
 0x181   :  { %v329_v34 = vsel %vm327_vm9, %v328_v30, %v326_v33  ;;  %v460_v50 = vadd.f32 %v459_v31, %v458_v26 }
 0x182   :  { %v330_v35 = vsub.f32 1.0, %v329_v34  ;;  %v275_v8 = vrot.slane %v274_v7, 1 }
 0x183   :  { %v461_v37 = vrot.slane %v460_v50, 1 }
 0x184   :  { %429 = vadd.xlane.f32.xlu2 %v428_v36  ;;  %v331_v39 = vmax.f32 %v330_v35, 0.0  ;;  %v276_v10 = vadd.f32 %v275_v8, %v274_v7  ;;  %v414_v36 = vrot.slane %v413_v14, 4 }
 0x185   :  { %v462_v40 = vadd.f32 %v461_v37, %v460_v50 }
 0x186   :  { %v332_v41 = vsel %vm44_vm0, %v331_v39, 0.0  ;;  %639 = vpush %v276_v10 }
 0x187   :  { %333 = vadd.xlane.f32.xlu1 %v332_v41  ;;  %v465_v42 = vsub.f32 %v462_v40, %v464_v38  ;;  %v415_v40 = vadd.f32 %v414_v36, %v413_v14 }
 0x189   :  { %v466_v43 = vmul.f32 0.14285715, %v465_v42 }
 0x18b   :  { %v576_v44 = vmul.f32 %v466_v43, %v466_v43  ;;  %v467_v45 = vmax.f32 %v466_v43, 0.0  ;;  %v416_v43 = vrot.slane %v415_v40, 2 }
 0x18d   :  { %v577_v46 = vsel %vm44_vm0, %v576_v44, 0.0  ;;  %670 = vrsqrt.f32 %v467_v45  ;;  %vm475_vm10 = vcmp.eq.f32.partialorder %v467_v45, inf  ;;  %v478_v58 = vand.u32 2147483648, %v467_v45 }
 0x18e   :  { %578 = vadd.xlane.f32.xlu0 %v577_v46  ;;  %vm477_vm11 = vcmp.eq.f32.partialorder %v467_v45, 0.0  ;;  %672 = vrcp.f32 %v755_v12 }
 0x193   :  { %v671_v47 = vpop.eup %670 }
 0x194   :  { %v469_v48 = vmul.f32 %v671_v47, %v467_v45  ;;  %v673_v15 = vpop.eup %672 }
 0x195   :  { %vm347_vm12 = vweird.f32 %v673_v15 }
 0x196   :  { %v470_v49 = vmul.f32 %v671_v47, %v469_v48 }
 0x198   :  { %v471_v52 = vmul.f32 0.5, %v470_v49 }
 0x19a   :  { %v472_v55 = vsub.f32 1.5, %v471_v52  ;;  %v417_v52 = vadd.f32 %v416_v43, %v415_v40 }
 0x19c   :  { %v473_v56 = vmul.f32 %v671_v47, %v472_v55 }
 0x19e   :  { %v474_v57 = vmul.f32 %v473_v56, %v467_v45 }
 0x1a0   :  { %v476_v59 = vsel %vm475_vm10, %v467_v45, %v474_v57 }
 0x1a1   :  { %v479_v60 = vsel %vm477_vm11, %v478_v58, %v476_v59  ;;  %v418_v59 = vrot.slane %v417_v52, 1 }
 0x1a2   :  { %v480_v61 = vsub.f32 1.0, %v479_v60 }
 0x1a3   :  { %v419_v1 = vadd.f32 %v418_v59, %v417_v52 }
 0x1a4   :  { %v481_v62 = vmax.f32 %v480_v61, 0.0 }
 0x1a6   :  { %v482_v63 = vsel %vm44_vm0, %v481_v62, 0.0  ;;  %vm600_vm0 = vcmp.eq.s32.totalorder %v811_v53, 3 }
 0x1a7   :  { %483 = vadd.xlane.f32.xlu1 %v482_v63 }
 0x1b7   :  { %s640_s0 = spop %639 }
 0x1b8   :  { %s278_s30 = smul.f32 0.00390625, %s640_s0 }
 0x1cf   :  { %v363_v13 = vpop.xlane.xlu2 %362 }
 0x1d0   :  { %v364_v16 = vrot.slane %v363_v13, 4 }
 0x1d2   :  { %v365_v17 = vadd.f32 %v364_v16, %v363_v13 }
 0x1d4   :  { %v366_v20 = vrot.slane %v365_v17, 2 }
 0x1d6   :  { %v367_v24 = vadd.f32 %v366_v20, %v365_v17 }
 0x1d8   :  { %v368_v30 = vrot.slane %v367_v24, 1 }
 0x1da   :  { %v369_v50 = vadd.f32 %v368_v30, %v367_v24 }
 0x1e1   :  { %v396_v51 = vpop.f32.mrf.mxu2 }
 0x1e2   :  { %v399_v6 = vmul.f32 %v396_v51, %v854_v32  ;;  %v343_v32 = vmul.f32 32.0, %v673_v15 }
 0x1e4   :  { %v400_v54 = vsel %vm48_vm1, %v399_v6, 0.0  ;;  %v344_v18 = vsub.f32 1.0, %v343_v32 }
 0x1e5   :  { %401 = vadd.xlane.f32.xlu2 %v400_v54 }
 0x1e6   :  { %v345_v23 = vmul.f32 %v673_v15, %v344_v18 }
 0x1e8   :  { %v346_v27 = vadd.f32 %v673_v15, %v345_v23 }
 0x1ea   :  { %v348_v34 = vsel %vm347_vm12, %v673_v15, %v346_v27  ;;  %v590_v27 = vstv %s278_s30 }
 0x1eb   :  { %v591_v30 = vsel %vm589_vm13, %v590_v27, 0.0 }
 0x1ed   :  { %561 = vadd.xlane.f32.xlu2 %v560_v11 }
 0x1ef   :  { %v513_v35 = vpop.xlane.xlu2 %512 }
 0x1f7   :  { %v430_v37 = vpop.xlane.xlu2 %429 }
 0x1f8   :  { %v431_v39 = vrot.slane %v430_v37, 4 }
 0x1fa   :  { %v334_v19 = vpop.xlane.xlu1 %333  ;;  %v432_v42 = vadd.f32 %v431_v39, %v430_v37 }
 0x1fb   :  { %v335_v21 = vrot.slane %v334_v19, 4 }
 0x1fc   :  { %v433_v47 = vrot.slane %v432_v42, 2 }
 0x1fd   :  { %v336_v22 = vadd.f32 %v335_v21, %v334_v19 }
 0x1fe   :  { %v434_v58 = vadd.f32 %v433_v47, %v432_v42 }
 0x1ff   :  { %v337_v5 = vrot.slane %v336_v22, 2 }
 0x200   :  { %v435_v0 = vrot.slane %v434_v58, 1 }
 0x201   :  { %v545_v25 = vpop.f32.mrf.mxu3  ;;  %v338_v26 = vadd.f32 %v337_v5, %v336_v22  ;;  %v579_v9 = vpop.xlane.xlu0 %578 }
 0x202   :  { %v548_v28 = vmul.f32 %v545_v25, %v886_v2  ;;  %v514_v2 = vrot.slane %v513_v35, 4  ;;  %v436_v6 = vadd.f32 %v435_v0, %v434_v58  ;;  %v580_v11 = vrot.slane %v579_v9, 4 }
 0x203   :  { %v339_v29 = vrot.slane %v338_v26, 1 }
 0x204   :  { %v549_v31 = vsel %vm48_vm1, %v548_v28, 0.0  ;;  %v515_v45 = vadd.f32 %v514_v2, %v513_v35  ;;  %v581_v13 = vadd.f32 %v580_v11, %v579_v9  ;;  %vm604_vm1 = vcmp.eq.s32.totalorder %v811_v53, 4 }
 0x205   :  { %550 = vadd.xlane.f32.xlu1 %v549_v31  ;;  %v340_v33 = vadd.f32 %v339_v29, %v338_v26 }
 0x206   :  { %v516_v55 = vrot.slane %v515_v45, 2  ;;  %v582_v16 = vrot.slane %v581_v13, 2 }
 0x207   :  { %641 = vpush %v340_v33 }
 0x208   :  { %643 = vpush %v348_v34  ;;  %v517_v62 = vadd.f32 %v516_v55, %v515_v45  ;;  %v583_v19 = vadd.f32 %v582_v16, %v581_v13 }
 0x209   :  { %645 = vpush %v369_v50 }
 0x20a   :  { %v518_v51 = vrot.slane %v517_v62, 1  ;;  %v584_v5 = vrot.slane %v583_v19, 1 }
 0x20c   :  { %v519_v54 = vadd.f32 %v518_v51, %v517_v62  ;;  %v585_v26 = vadd.f32 %v584_v5, %v583_v19 }
 0x21a   :  { %v484_v38 = vpop.xlane.xlu1 %483 }
 0x21b   :  { %v485_v41 = vrot.slane %v484_v38, 4 }
 0x21d   :  { %v486_v44 = vadd.f32 %v485_v41, %v484_v38 }
 0x21f   :  { %v487_v49 = vrot.slane %v486_v44, 2 }
 0x221   :  { %v488_v60 = vadd.f32 %v487_v49, %v486_v44 }
 0x223   :  { %v489_v3 = vrot.slane %v488_v60, 1 }
 0x225   :  { %v490_v7 = vadd.f32 %v489_v3, %v488_v60 }
 0x238   :  { %s642_s1 = spop %641 }
 0x239   :  { %s903_s19 = spop %643 }
 0x23a   :  { %s646_s20 = spop %645  ;;  %s350_s4 = smul.f32 %s903_s19, %s642_s1 }
 0x23b   :  { %s756_s1 = smov [#allocation12]  }
 0x23c   :  { %v593_v28 = vstv %s350_s4 }
 0x23d   :  { %v594_v31 = vsel %vm592_vm14, %v593_v28, 0.0 }
 0x23e   :  { %v595_v50 = vadd.f32 %v594_v31, %v591_v30 }
 0x258   :  { %v402_v46 = vpop.xlane.xlu2 %401 }
 0x259   :  { %v403_v48 = vrot.slane %v402_v46, 4 }
 0x25b   :  { %v404_v56 = vadd.f32 %v403_v48, %v402_v46 }
 0x25d   :  { %v405_v57 = vrot.slane %v404_v56, 2 }
 0x25f   :  { %v406_v61 = vadd.f32 %v405_v57, %v404_v56 }
 0x260   :  { %v562_v8 = vpop.xlane.xlu2 %561 }
 0x261   :  { %v407_v63 = vrot.slane %v406_v61, 1  ;;  %v563_v10 = vrot.slane %v562_v8, 4 }
 0x263   :  { %v408_v4 = vadd.f32 %v407_v63, %v406_v61  ;;  %v564_v12 = vadd.f32 %v563_v10, %v562_v8 }
 0x265   :  { %647 = vpush %v408_v4  ;;  %v565_v14 = vrot.slane %v564_v12, 2 }
 0x266   :  { %649 = vpush %v419_v1 }
 0x267   :  { %651 = vpush %v436_v6  ;;  %v566_v18 = vadd.f32 %v565_v14, %v564_v12 }
 0x268   :  { %653 = vpush %v490_v7 }
 0x269   :  { %655 = vpush %v519_v54  ;;  %v567_v22 = vrot.slane %v566_v18, 1 }
 0x26b   :  { %v568_v25 = vadd.f32 %v567_v22, %v566_v18 }
 0x278   :  { %v551_v15 = vpop.xlane.xlu1 %550 }
 0x279   :  { %v552_v32 = vrot.slane %v551_v15, 4 }
 0x27b   :  { %v553_v17 = vadd.f32 %v552_v32, %v551_v15 }
 0x27d   :  { %v554_v20 = vrot.slane %v553_v17, 2 }
 0x27f   :  { %v555_v21 = vadd.f32 %v554_v20, %v553_v17 }
 0x281   :  { %v556_v23 = vrot.slane %v555_v21, 1 }
 0x283   :  { %v557_v24 = vadd.f32 %v556_v23, %v555_v21 }
 0x285   :  { %657 = vpush %v557_v24 }
 0x286   :  { %659 = vpush %v568_v25 }
 0x287   :  { %661 = vpush %v585_v26 }
 0x296   :  { %s648_s21 = spop %647 }
 0x297   :  { %s650_s22 = spop %649  ;;  %s421_s23 = smul.f32 16.0, %s648_s21 }
 0x298   :  { %s423_s24 = smul.f32 64.0, %s650_s22  ;;  %s652_s29 = spop %651 }
 0x299   :  { %s422_s25 = ssub.f32 %s646_s20, %s421_s23  ;;  %s654_s3 = spop %653 }
 0x29a   :  { %s424_s26 = smul.f32 %s650_s22, %s423_s24  ;;  %s656_s6 = spop %655 }
 0x29b   :  { %s500_s7 = smul.f32 %s654_s3, %s903_s19  ;;  %s614_s19 = sshll.u32 %s756_s1, 4  ;;  %s615_s19 = int_to_ptr.vmem [resolvable:$true] %s614_s19 }
 0x29c   :  { %s425_s27 = sadd.f32 %s424_s26, %s422_s25  ;;  %s616_s22 = sshll.u32 %s917_s2, 4  ;;  %s617_s22 = int_to_ptr.hbm [resolvable:$true] %s616_s22 }
 0x29d   :  { %v597_v29 = vstv %s500_s7 }
 0x29e   :  { %s426_s28 = smul.f32 0.020408163, %s425_s27  ;;  %v598_v34 = vsel %vm596_vm15, %v597_v29, 0.0 }
 0x29f   :  { %v599_v36 = vadd.f32 %v598_v34, %v595_v50 }
 0x2a0   :  { %s438_s5 = ssub.f32 %s426_s28, %s652_s29 }
 0x2a2   :  { %s439_s12 = smul.f32 0.03125, %s438_s5 }
 0x2a4   :  { %v601_v33 = vstv %s439_s12 }
 0x2a5   :  { %v602_v35 = vsel %vm600_vm0, %v601_v33, 0.0 }
 0x2a6   :  { %v603_v37 = vadd.f32 %v602_v35, %v599_v36 }
 0x2b6   :  { %s658_s8 = spop %657 }
 0x2b7   :  { %s570_s9 = smul.f32 16.0, %s658_s8  ;;  %s660_s10 = spop %659 }
 0x2b8   :  { %s572_s11 = smul.f32 64.0, %s660_s10  ;;  %s662_s17 = spop %661 }
 0x2b9   :  { %s571_s13 = ssub.f32 %s656_s6, %s570_s9 }
 0x2ba   :  { %s573_s14 = smul.f32 %s660_s10, %s572_s11 }
 0x2bc   :  { %s574_s15 = sadd.f32 %s573_s14, %s571_s13 }
 0x2be   :  { %s575_s16 = smul.f32 0.020408163, %s574_s15 }
 0x2c0   :  { %s587_s18 = ssub.f32 %s575_s16, %s662_s17 }
 0x2c2   :  { %s588_s0 = smul.f32 0.03125, %s587_s18 }
 0x2c4   :  { %v605_v38 = vstv %s588_s0 }
 0x2c5   :  { %v606_v39 = vsel %vm604_vm1, %v605_v38, 0.0 }
 0x2c6   :  { %v607_v40 = vadd.f32 %v606_v39, %v603_v37 }
 0x2c8   :  { %608 = vst [vmem:[#allocation12] sm:$0x1] %v607_v40 }
 0x2c9   :  { %619 = dma.vmem_to_hbm [thread:$0]  %s615_s19, 16, %s617_s22, [#allocation9]  }
 0x2ca   :  { %750 = dma.done.wait [#allocation9], 16  }
 0x2cb   :  { %751 = vsyncadd [#allocation9], 4294967280 }
 0x2cc   :  { %624 = vsyncpa [#allocation8], 1 }
 0x2cd   :  { %625 = vsyncpa [#allocation11], 1 }
 0x2ce   :  { %626 = vsyncpa [#allocation9], 1 }

</bundles_post_ra>
